<compile_context>
chip_gen: v7x
topology: tpu7x:2x2x1
jax: 0.10.0
libtpu: 0.0.40
codegen_flags: <defaults>
</compile_context>

<pallas_src>
import functools
import math

import jax
import jax.numpy as jnp
from jax.experimental import pallas as pl
from jax.experimental.pallas import tpu as pltpu


def _sym_ce_kernel(x_ref, label_ref, out_ref, *, oh_lse):
    x = x_ref[...].astype(jnp.float32)            # (TN, C), upcast in-register
    labels = label_ref[...]                       # (TN, 1) int32
    tn, c = x.shape

    # Boolean label match (no float one-hot materialized).
    class_ids = jax.lax.broadcasted_iota(jnp.int32, (tn, c), 1)
    match = class_ids == labels                   # (TN, C) bool

    # Numerically stable log-sum-exp of the logits.
    m = jnp.max(x, axis=1, keepdims=True)
    z = x - m
    lse = jnp.log(jnp.sum(jnp.exp(z), axis=1, keepdims=True))      # (TN, 1)

    # Cross entropy per row: -log p[label] = lse - z[label].
    # NOTE: out-of-range labels silently give z_at_label = 0 (ce = lse) instead
    # of erroring like F.cross_entropy; inputs are assumed valid.
    z_at_label = jnp.sum(jnp.where(match, z, 0.0), axis=1, keepdims=True)
    ce = lse - z_at_label                                          # (TN, 1)

    # Reverse term: sum_c softmax(x)_c * log_softmax(one_hot)_c
    #             = p[label] - log(e + C - 1) = exp(-ce) - oh_lse.
    sce = jnp.exp(-ce) - oh_lse                                    # (TN, 1)

    # Per-row loss; the mean over the true N happens in the wrapper.
    # Rows of a ragged last block that fall past N are masked by the pipeline's
    # clipped writeback, so no explicit row masking is needed here.
    out_ref[...] = ce + sce


def _round_up(v, m):
    return (v + m - 1) // m * m


def _choose_block_rows(n, c, itemsize, vmem_budget_bytes=32 * 1024 * 1024):
    """Pick a row tile from the true per-step VMEM footprint.

    Accounts for:
      * lane padding: a (tn, C) tile occupies tn * round_up(C, 128) * itemsize,
      * double-buffered input DMAs (x2),
      * ~4 full-size f32 in-kernel temporaries (x_f32 / iota / match / exp(z)),
      * the (lane-padded) label and per-row-loss tiles,
      * the dtype-dependent sublane multiple (8 f32 / 16 bf16 / 32 int8).
    The 32 MiB budget (with vmem_limit_bytes=48 MiB) fits all of v5e/v6e
    (128 MiB physical) and v7x (64 MiB physical) with headroom.
    """
    c_pad = _round_up(c, 128)
    sub = max(8, 32 // max(1, itemsize))          # sublane packing multiple
    bytes_per_row = c_pad * (2 * itemsize         # double-buffered HBM block
                             + 4 * 4)             # ~4 live f32 temporaries
    bytes_per_row += 2 * 2 * 128 * 4              # label + output tiles (padded)
    rows = max(sub, vmem_budget_bytes // bytes_per_row)
    if rows < n:
        rows = max(sub, (rows // sub) * sub)
    return min(rows, max(n, 1))


def symmetric_cross_entropy(x, label, *, block_rows=None):
    """x: (N, C) float logits, label: (N,) int class indices -> scalar f32."""
    n, c = x.shape
    itemsize = jnp.dtype(x.dtype).itemsize
    sub = max(8, 32 // max(1, itemsize))
    if block_rows is None:
        block_rows = _choose_block_rows(n, c, itemsize)

    tn = min(block_rows, n)
    if tn < n:
        tn = max(sub, (tn // sub) * sub)          # dtype sublane multiple
    grid = pl.cdiv(n, tn)

    label2d = label.astype(jnp.int32).reshape(n, 1)
    oh_lse = float(math.log(math.e + c - 1))      # constant LSE of the one-hot

    kernel = functools.partial(_sym_ce_kernel, oh_lse=oh_lse)

    per_row = pl.pallas_call(
        kernel,
        out_shape=jax.ShapeDtypeStruct((n, 1), jnp.float32),
        grid=(grid,),
        in_specs=[
            pl.BlockSpec((tn, c), lambda i: (i, 0)),   # logits row-tile
            pl.BlockSpec((tn, 1), lambda i: (i, 0)),   # labels row-tile
        ],
        out_specs=pl.BlockSpec((tn, 1), lambda i: (i, 0)),   # per-row losses
        compiler_params=pltpu.CompilerParams(
            dimension_semantics=("parallel",),         # megacore-shardable
            vmem_limit_bytes=48 * 1024 * 1024,
        ),
    )(x, label2d)                                      # no wrapper-side astype

    return jnp.sum(per_row) / jnp.float32(n)


def _reference(x, label):
    # Plain-JAX reference mirroring the PyTorch module's math.
    c = x.shape[1]
    one_hot = jax.nn.one_hot(label, c, dtype=jnp.float32)
    logp = jax.nn.log_softmax(x, axis=1)
    ce = -jnp.mean(jnp.sum(one_hot * logp, axis=1))
    sce = jnp.mean(jnp.sum(jax.nn.softmax(x, axis=1)
                           * jax.nn.log_softmax(one_hot, axis=1), axis=1))
    return ce + sce


if __name__ == "__main__":
    key = jax.random.PRNGKey(0)
    kx, kl = jax.random.split(key)

    # Small shapes consistent with the module: batch N=8, classes C=32.
    N, C = 8, 32
    x = jax.random.normal(kx, (N, C), dtype=jnp.float32)
    label = jax.random.randint(kl, (N,), 0, C, dtype=jnp.int32)

    out = jax.block_until_ready(symmetric_cross_entropy(x, label))
    ref = _reference(x, label)
    assert jnp.allclose(out, ref, atol=1e-5, rtol=1e-5), (out, ref)

    # Multi-block + ragged-tail path (N not a multiple of the row tile).
    N2, C2 = 20, 32
    x2 = jax.random.normal(kx, (N2, C2), dtype=jnp.float32)
    label2 = jax.random.randint(kl, (N2,), 0, C2, dtype=jnp.int32)
    out2 = jax.block_until_ready(
        symmetric_cross_entropy(x2, label2, block_rows=8))
    ref2 = _reference(x2, label2)
    assert jnp.allclose(out2, ref2, atol=1e-5, rtol=1e-5), (out2, ref2)

    # bf16 logits read as-is and upcast in-register inside the kernel.
    N3, C3 = 16, 32
    x3 = jax.random.normal(kx, (N3, C3), dtype=jnp.float32).astype(jnp.bfloat16)
    label3 = jax.random.randint(kl, (N3,), 0, C3, dtype=jnp.int32)
    out3 = jax.block_until_ready(symmetric_cross_entropy(x3, label3))
    ref3 = _reference(x3.astype(jnp.float32), label3)
    assert jnp.allclose(out3, ref3, atol=1e-4, rtol=1e-4), (out3, ref3)

    print("KERNEL_OK")
</pallas_src>

<mosaic_0001>
module attributes {stable_mosaic.version = 11 : i64} {
  func.func @_sym_ce_kernel(%arg0: i32, %arg1: memref<8x32xf32, #tpu.memory_space<vmem>>, %arg2: memref<8x1xi32, #tpu.memory_space<vmem>>, %arg3: memref<8x1xf32, #tpu.memory_space<vmem>>) attributes {dimension_semantics = [#tpu.dimension_semantics<parallel>], iteration_bounds = array<i64: 1>, scalar_prefetch = 0 : i64, scratch_operands = 0 : i64, tpu.core_type = #tpu.core_type<tc>, window_params = [{transform_indices = @transform_0, window_bounds = array<i64: 8, 32>}, {transform_indices = @transform_1, window_bounds = array<i64: 8, 1>}, {transform_indices = @transform_2, window_bounds = array<i64: 8, 1>}]} {
    %c0 = arith.constant 0 : index
    %c0_0 = arith.constant 0 : index
    %0 = vector.load %arg1[%c0, %c0_0] : memref<8x32xf32, #tpu.memory_space<vmem>>, vector<8x32xf32>
    %c0_1 = arith.constant 0 : index
    %c0_2 = arith.constant 0 : index
    %1 = vector.load %arg2[%c0_1, %c0_2] : memref<8x1xi32, #tpu.memory_space<vmem>>, vector<8x1xi32>
    %2 = tpu.iota {dimensions = array<i32: 1>} : vector<8x32xi32>
    %3 = vector.broadcast %1 : vector<8x1xi32> to vector<8x32xi32>
    %4 = arith.cmpi eq, %2, %3 : vector<8x32xi32>
    %cst = arith.constant dense<0xFF800000> : vector<8xf32>
    %5 = vector.multi_reduction <maximumf>, %0, %cst [1] : vector<8x32xf32> to vector<8xf32>
    %6 = vector.shape_cast %5 : vector<8xf32> to vector<8x1xf32>
    %7 = vector.broadcast %6 : vector<8x1xf32> to vector<8x32xf32>
    %8 = arith.subf %0, %7 : vector<8x32xf32>
    %9 = math.exp %8 : vector<8x32xf32>
    %cst_3 = arith.constant dense<0.000000e+00> : vector<8xf32>
    %10 = vector.multi_reduction <add>, %9, %cst_3 [1] : vector<8x32xf32> to vector<8xf32>
    %11 = vector.shape_cast %10 : vector<8xf32> to vector<8x1xf32>
    %12 = math.log %11 : vector<8x1xf32>
    %cst_4 = arith.constant 0.000000e+00 : f32
    %13 = vector.broadcast %cst_4 : f32 to vector<8x32xf32>
    %14 = arith.select %4, %8, %13 : vector<8x32xi1>, vector<8x32xf32>
    %cst_5 = arith.constant dense<0.000000e+00> : vector<8xf32>
    %15 = vector.multi_reduction <add>, %14, %cst_5 [1] : vector<8x32xf32> to vector<8xf32>
    %16 = vector.shape_cast %15 : vector<8xf32> to vector<8x1xf32>
    %17 = arith.subf %12, %16 : vector<8x1xf32>
    %cst_6 = arith.constant 0.000000e+00 : f32
    %18 = vector.broadcast %cst_6 : f32 to vector<8x1xf32>
    %19 = arith.subf %18, %17 : vector<8x1xf32>
    %20 = math.exp %19 : vector<8x1xf32>
    %cst_7 = arith.constant 3.51804018 : f32
    %21 = vector.broadcast %cst_7 : f32 to vector<8x1xf32>
    %22 = arith.subf %20, %21 : vector<8x1xf32>
    %23 = arith.addf %17, %22 : vector<8x1xf32>
    %c0_8 = arith.constant 0 : index
    %c0_9 = arith.constant 0 : index
    %24 = vector.load %arg3[%c0_8, %c0_9] : memref<8x1xf32, #tpu.memory_space<vmem>>, vector<8x1xf32>
    tpu.vector_store %arg3[%c0_8, %c0_9], %23 {strides = array<i32>} : memref<8x1xf32, #tpu.memory_space<vmem>>, vector<8x1xf32>,
    return
  }
  func.func @transform_0(%arg0: i32) -> (i32, i32) {
    %c0_i32 = arith.constant 0 : i32
    %c0_i32_0 = arith.constant 0 : i32
    return %arg0, %c0_i32 : i32, i32
  }
  func.func @transform_1(%arg0: i32) -> (i32, i32) {
    %c0_i32 = arith.constant 0 : i32
    %c0_i32_0 = arith.constant 0 : i32
    return %arg0, %c0_i32 : i32, i32
  }
  func.func @transform_2(%arg0: i32) -> (i32, i32) {
    %c0_i32 = arith.constant 0 : i32
    %c0_i32_0 = arith.constant 0 : i32
    return %arg0, %c0_i32 : i32, i32
  }
}

</mosaic_0001>

<bundles_post_ra>
// kernel: tpu_custom_call.1
= control target key start
LH: loop header
LB: loop body
LE: loop exit
PB: predicated region body
PF: predicated region fallthrough
CT: control target
= control target key end

     0   :  { %vm19_vm0 = vcmask 261120   ;;  %v56_v1 = vmov 0   ;;  %v13_v7 = vlaneseq  ;;  %vm41_vm2 = vcmask 7168   ;;  %s84_s0 = inlined_call_operand.vmem [shape: f32[8,32], index: 0, kind: input, shape index: {}]   ;;  %s85_s1 = inlined_call_operand.vmem [shape: s32[8,1], index: 1, kind: input, shape index: {}]   ;;  %s86_s2 = inlined_call_operand.vmem [shape: f32[8,1], index: 2, kind: output, shape index: {}]  }
   0x1   :  { %v11_v0 = vld [vmem:[%s84_s0] sm:$0xff]  ;;  %49 = vset.pattern.permute.xlu0 %v56_v1 }
   0x2   :  { %v20_v2 = vsel %vm19_vm0, %v11_v0, -inf  ;;  %v12_v3 = vld [vmem:[%s85_s1] sm:$0xff]  ;;  %v14_v8 = vand.u32 127, %v13_v7 }
   0x3   :  { %21 = vmax.xlane.f32.xlu0 %v20_v2 }
  0x19   :  { %16 = vperm.xlu0 %49, %v12_v3  }
  0x90   :  { %v22_v4 = vpop.xlane.xlu0 %21 }
  0x91   :  { %v23_v5 = vsub.f32 %v11_v0, %v22_v4 }
  0x93   :  { %v24_v6 = vmul.f32 1.442695, %v23_v5 }
  0x95   :  { %50 = vpow2.f32 %v24_v6 }
  0x98   :  { %v17_v9 = vpop.permute.xlu0 %16 }
  0x99   :  { %vm18_vm1 = vcmp.eq.s32.totalorder %v14_v8, %v17_v9 }
  0x9a   :  { %v31_v12 = vsel %vm18_vm1, %v23_v5, 0.0 }
  0x9b   :  { %v32_v13 = vsel %vm19_vm0, %v31_v12, 0.0 }
  0x9f   :  { %v51_v10 = vpop.eup %50 }
  0xa0   :  { %v26_v11 = vsel %vm19_vm0, %v51_v10, 0.0 }
  0xa1   :  { %27 = vadd.xlane.f32.xlu1 %v26_v11 }
  0xa5   :  { %33 = vadd.xlane.f32.xlu1 %v32_v13 }
 0x12e   :  { %v28_v14 = vpop.xlane.xlu1 %27 }
 0x12f   :  { %52 = vlog2.f32 %v28_v14 }
 0x132   :  { %v34_v17 = vpop.xlane.xlu1 %33 }
 0x139   :  { %v53_v15 = vpop.eup %52 }
 0x13a   :  { %v30_v16 = vmul.f32 0.6931472, %v53_v15 }
 0x13c   :  { %v35_v18 = vsub.f32 %v30_v16, %v34_v17 }
 0x13e   :  { %v36_v19 = vsub.f32 0.0, %v35_v18 }
 0x140   :  { %v37_v20 = vmul.f32 1.442695, %v36_v19 }
 0x142   :  { %54 = vpow2.f32 %v37_v20 }
 0x14c   :  { %v55_v21 = vpop.eup %54 }
 0x14d   :  { %v47_v22 = vadd.f32 -3.5180402, %v55_v21 }
 0x14f   :  { %v40_v23 = vadd.f32 %v47_v22, %v35_v18 }
 0x151   :  { %42 = vst.msk [vmem:[%s86_s2] sm:$0xff] %vm41_vm2, %v40_v23 }

</bundles_post_ra>
